<compile_context>
chip_gen: v7x
topology: tpu7x:2x2x1
jax: 0.10.0
libtpu: 0.0.40
codegen_flags: <defaults>
</compile_context>

<pallas_src>
import jax
import jax.numpy as jnp
from jax.experimental import pallas as pl
from jax.experimental.pallas import tpu as pltpu

VOCAB = 64     # input_size
HIDDEN = 32    # hidden_size
SEQ_LEN = 8    # demo sequence length


def encoder_rnn_kernel(tok_ref,     # SMEM int32[T]      token ids
                       emb_ref,     # VMEM f32[VOCAB, H] embedding table (resident)
                       h0_ref,      # VMEM f32[1, H]     initial hidden
                       w_ih_ref,    # VMEM f32[H, 3H]    gate cols: r, z, n
                       w_hh_ref,    # VMEM f32[H, 3H]
                       b_ih_ref,    # VMEM f32[1, 3H]
                       b_hh_ref,    # VMEM f32[1, 3H]
                       out_ref):    # VMEM f32[T, H]     per-step hidden outputs
    T, H = out_ref.shape

    # Gather all T embedding rows from the VMEM-resident table (dynamic sublane slices
    # driven by SMEM scalars), then do the non-recurrent input-gate matmul ONCE for
    # the whole sequence: (T, H) @ (H, 3H).
    x_rows = [emb_ref[pl.ds(tok_ref[t], 1), :] for t in range(T)]
    x_all = jnp.concatenate(x_rows, axis=0)                          # (T, H)
    gi_all = (jnp.dot(x_all, w_ih_ref[...],
                      preferred_element_type=jnp.float32) + b_ih_ref[...])  # (T, 3H)

    w_hh = w_hh_ref[...]
    b_hh = b_hh_ref[...]
    h = h0_ref[...]                                                  # (1, H), stays in vregs

    # Serial GRU recurrence, fully unrolled (T is small and static). Only the
    # recurrent matmul gh = h @ W_hh remains on the per-step critical path.
    outs = []
    for t in range(T):
        gi = gi_all[t:t + 1, :]                                      # static sublane slice
        gh = jnp.dot(h, w_hh, preferred_element_type=jnp.float32) + b_hh
        # PyTorch GRU gate order r, z, n; b_hn stays inside the r* term.
        r = jax.nn.sigmoid(gi[:, 0:H] + gh[:, 0:H])
        z = jax.nn.sigmoid(gi[:, H:2 * H] + gh[:, H:2 * H])
        n = jnp.tanh(gi[:, 2 * H:3 * H] + r * gh[:, 2 * H:3 * H])
        h = (1.0 - z) * n + z * h
        outs.append(h)

    # Single dense store of the whole output block.
    out_ref[...] = jnp.concatenate(outs, axis=0)


def encoder_rnn_forward(tokens, hidden, emb, w_ih, w_hh, b_ih, b_hh):
    """Run the EncoderRNN over a token sequence in one single-program pallas_call.

    tokens: int32[T]; hidden: f32[1, 1, H].
    Returns (outputs f32[T, 1, H], hidden f32[1, 1, H]) -- identical per-step
    semantics to calling the PyTorch module once per token.
    """
    T = int(tokens.shape[0])
    H = int(hidden.shape[-1])
    V = int(emb.shape[0])
    h0 = hidden.reshape(1, H).astype(jnp.float32)
    # Clamp host-side: in-kernel VMEM indexing has no runtime bounds check.
    toks = jnp.clip(tokens.astype(jnp.int32), 0, V - 1)

    outputs = pl.pallas_call(
        encoder_rnn_kernel,
        out_shape=jax.ShapeDtypeStruct((T, H), jnp.float32),
        in_specs=[
            pl.BlockSpec(memory_space=pltpu.MemorySpace.SMEM),   # token ids
            pl.BlockSpec(memory_space=pltpu.MemorySpace.VMEM),   # embedding table
            pl.BlockSpec(memory_space=pltpu.MemorySpace.VMEM),   # h0
            pl.BlockSpec(memory_space=pltpu.MemorySpace.VMEM),   # W_ih (H, 3H)
            pl.BlockSpec(memory_space=pltpu.MemorySpace.VMEM),   # W_hh (H, 3H)
            pl.BlockSpec(memory_space=pltpu.MemorySpace.VMEM),   # b_ih (1, 3H)
            pl.BlockSpec(memory_space=pltpu.MemorySpace.VMEM),   # b_hh (1, 3H)
        ],
        out_specs=pl.BlockSpec(memory_space=pltpu.MemorySpace.VMEM),
    )(toks, emb, h0, w_ih, w_hh, b_ih, b_hh)

    outputs = outputs.reshape(T, 1, H)
    hidden_out = outputs[T - 1].reshape(1, 1, H)
    return outputs, hidden_out


def encoder_rnn_step(token_id, hidden, emb, w_ih, w_hh, b_ih, b_hh):
    """Single-step forward matching the original module's forward(input, hidden)."""
    H = int(hidden.shape[-1])
    outputs, h_out = encoder_rnn_forward(token_id.reshape(1), hidden,
                                         emb, w_ih, w_hh, b_ih, b_hh)
    return outputs.reshape(1, 1, H), h_out


def init_params(key, vocab, hidden):
    """nn.Embedding / nn.GRU-shaped params with the gate weights pre-fused.

    w_ih/w_hh are (H, 3H): columns [0:H]=r, [H:2H]=z, [2H:3H]=n, stored transposed
    so the kernel computes x @ w_ih (== x @ W_ih^T in PyTorch).
    """
    k_emb, k_wih, k_whh, k_bih, k_bhh = jax.random.split(key, 5)
    bound = 1.0 / jnp.sqrt(hidden)
    emb = jax.random.normal(k_emb, (vocab, hidden), jnp.float32)
    w_ih = jax.random.uniform(k_wih, (hidden, 3 * hidden), jnp.float32, -bound, bound)
    w_hh = jax.random.uniform(k_whh, (hidden, 3 * hidden), jnp.float32, -bound, bound)
    b_ih = jax.random.uniform(k_bih, (1, 3 * hidden), jnp.float32, -bound, bound)
    b_hh = jax.random.uniform(k_bhh, (1, 3 * hidden), jnp.float32, -bound, bound)
    return emb, w_ih, w_hh, b_ih, b_hh


def reference_forward(tokens, hidden, emb, w_ih, w_hh, b_ih, b_hh):
    """Pure-JAX reference: the PyTorch per-step forward applied over tokens."""
    H = hidden.shape[-1]
    h = hidden.reshape(1, H)
    outs = []
    for t in range(tokens.shape[0]):
        x = emb[tokens[t]].reshape(1, H)
        gi = x @ w_ih + b_ih
        gh = h @ w_hh + b_hh
        r = jax.nn.sigmoid(gi[:, 0:H] + gh[:, 0:H])
        z = jax.nn.sigmoid(gi[:, H:2 * H] + gh[:, H:2 * H])
        n = jnp.tanh(gi[:, 2 * H:3 * H] + r * gh[:, 2 * H:3 * H])
        h = (1.0 - z) * n + z * h
        outs.append(h)
    return jnp.stack(outs, axis=0), h.reshape(1, 1, H)


if __name__ == "__main__":
    key = jax.random.PRNGKey(0)
    emb, w_ih, w_hh, b_ih, b_hh = init_params(key, VOCAB, HIDDEN)

    tokens = jnp.array([7, 3, 12, 0, 41, 63, 5, 9], dtype=jnp.int32)  # len SEQ_LEN
    hidden0 = jnp.zeros((1, 1, HIDDEN), dtype=jnp.float32)            # initHidden()

    # Whole sequence in a single-program pallas_call (recurrence unrolled in-kernel).
    outs, h_out = encoder_rnn_forward(tokens, hidden0, emb, w_ih, w_hh, b_ih, b_hh)
    outs = jax.block_until_ready(outs)
    h_out = jax.block_until_ready(h_out)

    ref_outs, ref_h = reference_forward(tokens, hidden0, emb, w_ih, w_hh, b_ih, b_hh)
    assert outs.shape == (SEQ_LEN, 1, HIDDEN) and h_out.shape == (1, 1, HIDDEN)
    assert jnp.allclose(outs, ref_outs, atol=1e-5), "sequence output mismatch vs reference"
    assert jnp.allclose(h_out, ref_h, atol=1e-5), "hidden mismatch vs reference"

    # Single-step call matching the original module's forward(input, hidden).
    out1, h1 = encoder_rnn_step(tokens[:1], hidden0, emb, w_ih, w_hh, b_ih, b_hh)
    out1 = jax.block_until_ready(out1)
    h1 = jax.block_until_ready(h1)
    ref_o1, ref_h1 = reference_forward(tokens[:1], hidden0, emb, w_ih, w_hh, b_ih, b_hh)
    assert jnp.allclose(out1, ref_o1.reshape(1, 1, HIDDEN), atol=1e-5), "step output mismatch"
    assert jnp.allclose(h1, ref_h1, atol=1e-5), "step hidden mismatch"

    # TODO(synk): the remaining big throughput lever is batching B independent
    # sequences so the recurrent matmul becomes (B,H)@(H,3H); the PyTorch module's
    # forward is single-sequence, so it is left out here.
    print("KERNEL_OK")
</pallas_src>

<mosaic_0001>
module attributes {stable_mosaic.version = 11 : i64} {
  func.func @encoder_rnn_kernel(%arg0: memref<8xi32, #tpu.memory_space<smem>>, %arg1: memref<64x32xf32, #tpu.memory_space<vmem>>, %arg2: memref<1x32xf32, #tpu.memory_space<vmem>>, %arg3: memref<32x96xf32, #tpu.memory_space<vmem>>, %arg4: memref<32x96xf32, #tpu.memory_space<vmem>>, %arg5: memref<1x96xf32, #tpu.memory_space<vmem>>, %arg6: memref<1x96xf32, #tpu.memory_space<vmem>>, %arg7: memref<8x32xf32, #tpu.memory_space<vmem>>) attributes {dimension_semantics = [], scalar_prefetch = 0 : i64, scratch_operands = 0 : i64, tpu.core_type = #tpu.core_type<tc>} {
    %c0 = arith.constant 0 : index
    %0 = memref.load %arg0[%c0] : memref<8xi32, #tpu.memory_space<smem>>
    %1 = arith.index_cast %0 : i32 to index
    %c0_0 = arith.constant 0 : index
    %2 = vector.load %arg1[%1, %c0_0] : memref<64x32xf32, #tpu.memory_space<vmem>>, vector<1x32xf32>
    %c1 = arith.constant 1 : index
    %3 = memref.load %arg0[%c1] : memref<8xi32, #tpu.memory_space<smem>>
    %4 = arith.index_cast %3 : i32 to index
    %c0_1 = arith.constant 0 : index
    %5 = vector.load %arg1[%4, %c0_1] : memref<64x32xf32, #tpu.memory_space<vmem>>, vector<1x32xf32>
    %c2 = arith.constant 2 : index
    %6 = memref.load %arg0[%c2] : memref<8xi32, #tpu.memory_space<smem>>
    %7 = arith.index_cast %6 : i32 to index
    %c0_2 = arith.constant 0 : index
    %8 = vector.load %arg1[%7, %c0_2] : memref<64x32xf32, #tpu.memory_space<vmem>>, vector<1x32xf32>
    %c3 = arith.constant 3 : index
    %9 = memref.load %arg0[%c3] : memref<8xi32, #tpu.memory_space<smem>>
    %10 = arith.index_cast %9 : i32 to index
    %c0_3 = arith.constant 0 : index
    %11 = vector.load %arg1[%10, %c0_3] : memref<64x32xf32, #tpu.memory_space<vmem>>, vector<1x32xf32>
    %c4 = arith.constant 4 : index
    %12 = memref.load %arg0[%c4] : memref<8xi32, #tpu.memory_space<smem>>
    %13 = arith.index_cast %12 : i32 to index
    %c0_4 = arith.constant 0 : index
    %14 = vector.load %arg1[%13, %c0_4] : memref<64x32xf32, #tpu.memory_space<vmem>>, vector<1x32xf32>
    %c5 = arith.constant 5 : index
    %15 = memref.load %arg0[%c5] : memref<8xi32, #tpu.memory_space<smem>>
    %16 = arith.index_cast %15 : i32 to index
    %c0_5 = arith.constant 0 : index
    %17 = vector.load %arg1[%16, %c0_5] : memref<64x32xf32, #tpu.memory_space<vmem>>, vector<1x32xf32>
    %c6 = arith.constant 6 : index
    %18 = memref.load %arg0[%c6] : memref<8xi32, #tpu.memory_space<smem>>
    %19 = arith.index_cast %18 : i32 to index
    %c0_6 = arith.constant 0 : index
    %20 = vector.load %arg1[%19, %c0_6] : memref<64x32xf32, #tpu.memory_space<vmem>>, vector<1x32xf32>
    %c7 = arith.constant 7 : index
    %21 = memref.load %arg0[%c7] : memref<8xi32, #tpu.memory_space<smem>>
    %22 = arith.index_cast %21 : i32 to index
    %c0_7 = arith.constant 0 : index
    %23 = vector.load %arg1[%22, %c0_7] : memref<64x32xf32, #tpu.memory_space<vmem>>, vector<1x32xf32>
    %24 = tpu.concatenate %2, %5, %8, %11, %14, %17, %20, %23 in 0 : vector<1x32xf32>, vector<1x32xf32>, vector<1x32xf32>, vector<1x32xf32>, vector<1x32xf32>, vector<1x32xf32>, vector<1x32xf32>, vector<1x32xf32> -> vector<8x32xf32>
    %c0_8 = arith.constant 0 : index
    %c0_9 = arith.constant 0 : index
    %25 = vector.load %arg3[%c0_8, %c0_9] : memref<32x96xf32, #tpu.memory_space<vmem>>, vector<32x96xf32>
    %cst = arith.constant dense<0.000000e+00> : vector<8x96xf32>
    %26 = tpu.matmul %24, %25, %cst {dimension_numbers = #tpu.dot_dimension_numbers<[1], [0], [0], [1], [0, 0, 1, 1], [], []>} : vector<8x32xf32>, vector<32x96xf32>, vector<8x96xf32> -> vector<8x96xf32>
    %c0_10 = arith.constant 0 : index
    %c0_11 = arith.constant 0 : index
    %27 = vector.load %arg5[%c0_10, %c0_11] : memref<1x96xf32, #tpu.memory_space<vmem>>, vector<1x96xf32>
    %28 = vector.broadcast %27 : vector<1x96xf32> to vector<8x96xf32>
    %29 = arith.addf %26, %28 : vector<8x96xf32>
    %c0_12 = arith.constant 0 : index
    %c0_13 = arith.constant 0 : index
    %30 = vector.load %arg4[%c0_12, %c0_13] : memref<32x96xf32, #tpu.memory_space<vmem>>, vector<32x96xf32>
    %c0_14 = arith.constant 0 : index
    %c0_15 = arith.constant 0 : index
    %31 = vector.load %arg6[%c0_14, %c0_15] : memref<1x96xf32, #tpu.memory_space<vmem>>, vector<1x96xf32>
    %c0_16 = arith.constant 0 : index
    %c0_17 = arith.constant 0 : index
    %32 = vector.load %arg2[%c0_16, %c0_17] : memref<1x32xf32, #tpu.memory_space<vmem>>, vector<1x32xf32>
    %33 = vector.extract_strided_slice %29 {offsets = [0, 0], sizes = [1, 96], strides = [1, 1]} : vector<8x96xf32> to vector<1x96xf32>
    %cst_18 = arith.constant dense<0.000000e+00> : vector<1x96xf32>
    %34 = tpu.matmul %32, %30, %cst_18 {dimension_numbers = #tpu.dot_dimension_numbers<[1], [0], [0], [1], [0, 0, 1, 1], [], []>} : vector<1x32xf32>, vector<32x96xf32>, vector<1x96xf32> -> vector<1x96xf32>
    %35 = arith.addf %34, %31 : vector<1x96xf32>
    %36 = vector.extract_strided_slice %33 {offsets = [0, 0], sizes = [1, 32], strides = [1, 1]} : vector<1x96xf32> to vector<1x32xf32>
    %37 = vector.extract_strided_slice %35 {offsets = [0, 0], sizes = [1, 32], strides = [1, 1]} : vector<1x96xf32> to vector<1x32xf32>
    %38 = arith.addf %36, %37 : vector<1x32xf32>
    %39 = arith.negf %38 : vector<1x32xf32>
    %40 = math.exp %39 : vector<1x32xf32>
    %cst_19 = arith.constant 1.000000e+00 : f32
    %41 = vector.broadcast %cst_19 : f32 to vector<1x32xf32>
    %42 = arith.addf %41, %40 : vector<1x32xf32>
    %43 = arith.divf %41, %42 : vector<1x32xf32>
    %44 = vector.extract_strided_slice %33 {offsets = [0, 32], sizes = [1, 32], strides = [1, 1]} : vector<1x96xf32> to vector<1x32xf32>
    %45 = vector.extract_strided_slice %35 {offsets = [0, 32], sizes = [1, 32], strides = [1, 1]} : vector<1x96xf32> to vector<1x32xf32>
    %46 = arith.addf %44, %45 : vector<1x32xf32>
    %47 = arith.negf %46 : vector<1x32xf32>
    %48 = math.exp %47 : vector<1x32xf32>
    %cst_20 = arith.constant 1.000000e+00 : f32
    %49 = vector.broadcast %cst_20 : f32 to vector<1x32xf32>
    %50 = arith.addf %49, %48 : vector<1x32xf32>
    %51 = arith.divf %49, %50 : vector<1x32xf32>
    %52 = vector.extract_strided_slice %33 {offsets = [0, 64], sizes = [1, 32], strides = [1, 1]} : vector<1x96xf32> to vector<1x32xf32>
    %53 = vector.extract_strided_slice %35 {offsets = [0, 64], sizes = [1, 32], strides = [1, 1]} : vector<1x96xf32> to vector<1x32xf32>
    %54 = arith.mulf %43, %53 : vector<1x32xf32>
    %55 = arith.addf %52, %54 : vector<1x32xf32>
    %56 = math.tanh %55 : vector<1x32xf32>
    %cst_21 = arith.constant 1.000000e+00 : f32
    %57 = vector.broadcast %cst_21 : f32 to vector<1x32xf32>
    %58 = arith.subf %57, %51 : vector<1x32xf32>
    %59 = arith.mulf %58, %56 : vector<1x32xf32>
    %60 = arith.mulf %51, %32 : vector<1x32xf32>
    %61 = arith.addf %59, %60 : vector<1x32xf32>
    %62 = vector.extract_strided_slice %29 {offsets = [1, 0], sizes = [1, 96], strides = [1, 1]} : vector<8x96xf32> to vector<1x96xf32>
    %cst_22 = arith.constant dense<0.000000e+00> : vector<1x96xf32>
    %63 = tpu.matmul %61, %30, %cst_22 {dimension_numbers = #tpu.dot_dimension_numbers<[1], [0], [0], [1], [0, 0, 1, 1], [], []>} : vector<1x32xf32>, vector<32x96xf32>, vector<1x96xf32> -> vector<1x96xf32>
    %64 = arith.addf %63, %31 : vector<1x96xf32>
    %65 = vector.extract_strided_slice %62 {offsets = [0, 0], sizes = [1, 32], strides = [1, 1]} : vector<1x96xf32> to vector<1x32xf32>
    %66 = vector.extract_strided_slice %64 {offsets = [0, 0], sizes = [1, 32], strides = [1, 1]} : vector<1x96xf32> to vector<1x32xf32>
    %67 = arith.addf %65, %66 : vector<1x32xf32>
    %68 = arith.negf %67 : vector<1x32xf32>
    %69 = math.exp %68 : vector<1x32xf32>
    %cst_23 = arith.constant 1.000000e+00 : f32
    %70 = vector.broadcast %cst_23 : f32 to vector<1x32xf32>
    %71 = arith.addf %70, %69 : vector<1x32xf32>
    %72 = arith.divf %70, %71 : vector<1x32xf32>
    %73 = vector.extract_strided_slice %62 {offsets = [0, 32], sizes = [1, 32], strides = [1, 1]} : vector<1x96xf32> to vector<1x32xf32>
    %74 = vector.extract_strided_slice %64 {offsets = [0, 32], sizes = [1, 32], strides = [1, 1]} : vector<1x96xf32> to vector<1x32xf32>
    %75 = arith.addf %73, %74 : vector<1x32xf32>
    %76 = arith.negf %75 : vector<1x32xf32>
    %77 = math.exp %76 : vector<1x32xf32>
    %cst_24 = arith.constant 1.000000e+00 : f32
    %78 = vector.broadcast %cst_24 : f32 to vector<1x32xf32>
    %79 = arith.addf %78, %77 : vector<1x32xf32>
    %80 = arith.divf %78, %79 : vector<1x32xf32>
    %81 = vector.extract_strided_slice %62 {offsets = [0, 64], sizes = [1, 32], strides = [1, 1]} : vector<1x96xf32> to vector<1x32xf32>
    %82 = vector.extract_strided_slice %64 {offsets = [0, 64], sizes = [1, 32], strides = [1, 1]} : vector<1x96xf32> to vector<1x32xf32>
    %83 = arith.mulf %72, %82 : vector<1x32xf32>
    %84 = arith.addf %81, %83 : vector<1x32xf32>
    %85 = math.tanh %84 : vector<1x32xf32>
    %cst_25 = arith.constant 1.000000e+00 : f32
    %86 = vector.broadcast %cst_25 : f32 to vector<1x32xf32>
    %87 = arith.subf %86, %80 : vector<1x32xf32>
    %88 = arith.mulf %87, %85 : vector<1x32xf32>
    %89 = arith.mulf %80, %61 : vector<1x32xf32>
    %90 = arith.addf %88, %89 : vector<1x32xf32>
    %91 = vector.extract_strided_slice %29 {offsets = [2, 0], sizes = [1, 96], strides = [1, 1]} : vector<8x96xf32> to vector<1x96xf32>
    %cst_26 = arith.constant dense<0.000000e+00> : vector<1x96xf32>
    %92 = tpu.matmul %90, %30, %cst_26 {dimension_numbers = #tpu.dot_dimension_numbers<[1], [0], [0], [1], [0, 0, 1, 1], [], []>} : vector<1x32xf32>, vector<32x96xf32>, vector<1x96xf32> -> vector<1x96xf32>
    %93 = arith.addf %92, %31 : vector<1x96xf32>
    %94 = vector.extract_strided_slice %91 {offsets = [0, 0], sizes = [1, 32], strides = [1, 1]} : vector<1x96xf32> to vector<1x32xf32>
    %95 = vector.extract_strided_slice %93 {offsets = [0, 0], sizes = [1, 32], strides = [1, 1]} : vector<1x96xf32> to vector<1x32xf32>
    %96 = arith.addf %94, %95 : vector<1x32xf32>
    %97 = arith.negf %96 : vector<1x32xf32>
    %98 = math.exp %97 : vector<1x32xf32>
    %cst_27 = arith.constant 1.000000e+00 : f32
    %99 = vector.broadcast %cst_27 : f32 to vector<1x32xf32>
    %100 = arith.addf %99, %98 : vector<1x32xf32>
    %101 = arith.divf %99, %100 : vector<1x32xf32>
    %102 = vector.extract_strided_slice %91 {offsets = [0, 32], sizes = [1, 32], strides = [1, 1]} : vector<1x96xf32> to vector<1x32xf32>
    %103 = vector.extract_strided_slice %93 {offsets = [0, 32], sizes = [1, 32], strides = [1, 1]} : vector<1x96xf32> to vector<1x32xf32>
    %104 = arith.addf %102, %103 : vector<1x32xf32>
    %105 = arith.negf %104 : vector<1x32xf32>
    %106 = math.exp %105 : vector<1x32xf32>
    %cst_28 = arith.constant 1.000000e+00 : f32
    %107 = vector.broadcast %cst_28 : f32 to vector<1x32xf32>
    %108 = arith.addf %107, %106 : vector<1x32xf32>
    %109 = arith.divf %107, %108 : vector<1x32xf32>
    %110 = vector.extract_strided_slice %91 {offsets = [0, 64], sizes = [1, 32], strides = [1, 1]} : vector<1x96xf32> to vector<1x32xf32>
    %111 = vector.extract_strided_slice %93 {offsets = [0, 64], sizes = [1, 32], strides = [1, 1]} : vector<1x96xf32> to vector<1x32xf32>
    %112 = arith.mulf %101, %111 : vector<1x32xf32>
    %113 = arith.addf %110, %112 : vector<1x32xf32>
    %114 = math.tanh %113 : vector<1x32xf32>
    %cst_29 = arith.constant 1.000000e+00 : f32
    %115 = vector.broadcast %cst_29 : f32 to vector<1x32xf32>
    %116 = arith.subf %115, %109 : vector<1x32xf32>
    %117 = arith.mulf %116, %114 : vector<1x32xf32>
    %118 = arith.mulf %109, %90 : vector<1x32xf32>
    %119 = arith.addf %117, %118 : vector<1x32xf32>
    %120 = vector.extract_strided_slice %29 {offsets = [3, 0], sizes = [1, 96], strides = [1, 1]} : vector<8x96xf32> to vector<1x96xf32>
    %cst_30 = arith.constant dense<0.000000e+00> : vector<1x96xf32>
    %121 = tpu.matmul %119, %30, %cst_30 {dimension_numbers = #tpu.dot_dimension_numbers<[1], [0], [0], [1], [0, 0, 1, 1], [], []>} : vector<1x32xf32>, vector<32x96xf32>, vector<1x96xf32> -> vector<1x96xf32>
    %122 = arith.addf %121, %31 : vector<1x96xf32>
    %123 = vector.extract_strided_slice %120 {offsets = [0, 0], sizes = [1, 32], strides = [1, 1]} : vector<1x96xf32> to vector<1x32xf32>
    %124 = vector.extract_strided_slice %122 {offsets = [0, 0], sizes = [1, 32], strides = [1, 1]} : vector<1x96xf32> to vector<1x32xf32>
    %125 = arith.addf %123, %124 : vector<1x32xf32>
    %126 = arith.negf %125 : vector<1x32xf32>
    %127 = math.exp %126 : vector<1x32xf32>
    %cst_31 = arith.constant 1.000000e+00 : f32
    %128 = vector.broadcast %cst_31 : f32 to vector<1x32xf32>
    %129 = arith.addf %128, %127 : vector<1x32xf32>
    %130 = arith.divf %128, %129 : vector<1x32xf32>
    %131 = vector.extract_strided_slice %120 {offsets = [0, 32], sizes = [1, 32], strides = [1, 1]} : vector<1x96xf32> to vector<1x32xf32>
    %132 = vector.extract_strided_slice %122 {offsets = [0, 32], sizes = [1, 32], strides = [1, 1]} : vector<1x96xf32> to vector<1x32xf32>
    %133 = arith.addf %131, %132 : vector<1x32xf32>
    %134 = arith.negf %133 : vector<1x32xf32>
    %135 = math.exp %134 : vector<1x32xf32>
    %cst_32 = arith.constant 1.000000e+00 : f32
    %136 = vector.broadcast %cst_32 : f32 to vector<1x32xf32>
    %137 = arith.addf %136, %135 : vector<1x32xf32>
    %138 = arith.divf %136, %137 : vector<1x32xf32>
    %139 = vector.extract_strided_slice %120 {offsets = [0, 64], sizes = [1, 32], strides = [1, 1]} : vector<1x96xf32> to vector<1x32xf32>
    %140 = vector.extract_strided_slice %122 {offsets = [0, 64], sizes = [1, 32], strides = [1, 1]} : vector<1x96xf32> to vector<1x32xf32>
    %141 = arith.mulf %130, %140 : vector<1x32xf32>
    %142 = arith.addf %139, %141 : vector<1x32xf32>
    %143 = math.tanh %142 : vector<1x32xf32>
    %cst_33 = arith.constant 1.000000e+00 : f32
    %144 = vector.broadcast %cst_33 : f32 to vector<1x32xf32>
    %145 = arith.subf %144, %138 : vector<1x32xf32>
    %146 = arith.mulf %145, %143 : vector<1x32xf32>
    %147 = arith.mulf %138, %119 : vector<1x32xf32>
    %148 = arith.addf %146, %147 : vector<1x32xf32>
    %149 = vector.extract_strided_slice %29 {offsets = [4, 0], sizes = [1, 96], strides = [1, 1]} : vector<8x96xf32> to vector<1x96xf32>
    %cst_34 = arith.constant dense<0.000000e+00> : vector<1x96xf32>
    %150 = tpu.matmul %148, %30, %cst_34 {dimension_numbers = #tpu.dot_dimension_numbers<[1], [0], [0], [1], [0, 0, 1, 1], [], []>} : vector<1x32xf32>, vector<32x96xf32>, vector<1x96xf32> -> vector<1x96xf32>
    %151 = arith.addf %150, %31 : vector<1x96xf32>
    %152 = vector.extract_strided_slice %149 {offsets = [0, 0], sizes = [1, 32], strides = [1, 1]} : vector<1x96xf32> to vector<1x32xf32>
    %153 = vector.extract_strided_slice %151 {offsets = [0, 0], sizes = [1, 32], strides = [1, 1]} : vector<1x96xf32> to vector<1x32xf32>
    %154 = arith.addf %152, %153 : vector<1x32xf32>
    %155 = arith.negf %154 : vector<1x32xf32>
    %156 = math.exp %155 : vector<1x32xf32>
    %cst_35 = arith.constant 1.000000e+00 : f32
    %157 = vector.broadcast %cst_35 : f32 to vector<1x32xf32>
    %158 = arith.addf %157, %156 : vector<1x32xf32>
    %159 = arith.divf %157, %158 : vector<1x32xf32>
    %160 = vector.extract_strided_slice %149 {offsets = [0, 32], sizes = [1, 32], strides = [1, 1]} : vector<1x96xf32> to vector<1x32xf32>
    %161 = vector.extract_strided_slice %151 {offsets = [0, 32], sizes = [1, 32], strides = [1, 1]} : vector<1x96xf32> to vector<1x32xf32>
    %162 = arith.addf %160, %161 : vector<1x32xf32>
    %163 = arith.negf %162 : vector<1x32xf32>
    %164 = math.exp %163 : vector<1x32xf32>
    %cst_36 = arith.constant 1.000000e+00 : f32
    %165 = vector.broadcast %cst_36 : f32 to vector<1x32xf32>
    %166 = arith.addf %165, %164 : vector<1x32xf32>
    %167 = arith.divf %165, %166 : vector<1x32xf32>
    %168 = vector.extract_strided_slice %149 {offsets = [0, 64], sizes = [1, 32], strides = [1, 1]} : vector<1x96xf32> to vector<1x32xf32>
    %169 = vector.extract_strided_slice %151 {offsets = [0, 64], sizes = [1, 32], strides = [1, 1]} : vector<1x96xf32> to vector<1x32xf32>
    %170 = arith.mulf %159, %169 : vector<1x32xf32>
    %171 = arith.addf %168, %170 : vector<1x32xf32>
    %172 = math.tanh %171 : vector<1x32xf32>
    %cst_37 = arith.constant 1.000000e+00 : f32
    %173 = vector.broadcast %cst_37 : f32 to vector<1x32xf32>
    %174 = arith.subf %173, %167 : vector<1x32xf32>
    %175 = arith.mulf %174, %172 : vector<1x32xf32>
    %176 = arith.mulf %167, %148 : vector<1x32xf32>
    %177 = arith.addf %175, %176 : vector<1x32xf32>
    %178 = vector.extract_strided_slice %29 {offsets = [5, 0], sizes = [1, 96], strides = [1, 1]} : vector<8x96xf32> to vector<1x96xf32>
    %cst_38 = arith.constant dense<0.000000e+00> : vector<1x96xf32>
    %179 = tpu.matmul %177, %30, %cst_38 {dimension_numbers = #tpu.dot_dimension_numbers<[1], [0], [0], [1], [0, 0, 1, 1], [], []>} : vector<1x32xf32>, vector<32x96xf32>, vector<1x96xf32> -> vector<1x96xf32>
    %180 = arith.addf %179, %31 : vector<1x96xf32>
    %181 = vector.extract_strided_slice %178 {offsets = [0, 0], sizes = [1, 32], strides = [1, 1]} : vector<1x96xf32> to vector<1x32xf32>
    %182 = vector.extract_strided_slice %180 {offsets = [0, 0], sizes = [1, 32], strides = [1, 1]} : vector<1x96xf32> to vector<1x32xf32>
    %183 = arith.addf %181, %182 : vector<1x32xf32>
    %184 = arith.negf %183 : vector<1x32xf32>
    %185 = math.exp %184 : vector<1x32xf32>
    %cst_39 = arith.constant 1.000000e+00 : f32
    %186 = vector.broadcast %cst_39 : f32 to vector<1x32xf32>
    %187 = arith.addf %186, %185 : vector<1x32xf32>
    %188 = arith.divf %186, %187 : vector<1x32xf32>
    %189 = vector.extract_strided_slice %178 {offsets = [0, 32], sizes = [1, 32], strides = [1, 1]} : vector<1x96xf32> to vector<1x32xf32>
    %190 = vector.extract_strided_slice %180 {offsets = [0, 32], sizes = [1, 32], strides = [1, 1]} : vector<1x96xf32> to vector<1x32xf32>
    %191 = arith.addf %189, %190 : vector<1x32xf32>
    %192 = arith.negf %191 : vector<1x32xf32>
    %193 = math.exp %192 : vector<1x32xf32>
    %cst_40 = arith.constant 1.000000e+00 : f32
    %194 = vector.broadcast %cst_40 : f32 to vector<1x32xf32>
    %195 = arith.addf %194, %193 : vector<1x32xf32>
    %196 = arith.divf %194, %195 : vector<1x32xf32>
    %197 = vector.extract_strided_slice %178 {offsets = [0, 64], sizes = [1, 32], strides = [1, 1]} : vector<1x96xf32> to vector<1x32xf32>
    %198 = vector.extract_strided_slice %180 {offsets = [0, 64], sizes = [1, 32], strides = [1, 1]} : vector<1x96xf32> to vector<1x32xf32>
    %199 = arith.mulf %188, %198 : vector<1x32xf32>
    %200 = arith.addf %197, %199 : vector<1x32xf32>
    %201 = math.tanh %200 : vector<1x32xf32>
    %cst_41 = arith.constant 1.000000e+00 : f32
    %202 = vector.broadcast %cst_41 : f32 to vector<1x32xf32>
    %203 = arith.subf %202, %196 : vector<1x32xf32>
    %204 = arith.mulf %203, %201 : vector<1x32xf32>
    %205 = arith.mulf %196, %177 : vector<1x32xf32>
    %206 = arith.addf %204, %205 : vector<1x32xf32>
    %207 = vector.extract_strided_slice %29 {offsets = [6, 0], sizes = [1, 96], strides = [1, 1]} : vector<8x96xf32> to vector<1x96xf32>
    %cst_42 = arith.constant dense<0.000000e+00> : vector<1x96xf32>
    %208 = tpu.matmul %206, %30, %cst_42 {dimension_numbers = #tpu.dot_dimension_numbers<[1], [0], [0], [1], [0, 0, 1, 1], [], []>} : vector<1x32xf32>, vector<32x96xf32>, vector<1x96xf32> -> vector<1x96xf32>
    %209 = arith.addf %208, %31 : vector<1x96xf32>
    %210 = vector.extract_strided_slice %207 {offsets = [0, 0], sizes = [1, 32], strides = [1, 1]} : vector<1x96xf32> to vector<1x32xf32>
    %211 = vector.extract_strided_slice %209 {offsets = [0, 0], sizes = [1, 32], strides = [1, 1]} : vector<1x96xf32> to vector<1x32xf32>
    %212 = arith.addf %210, %211 : vector<1x32xf32>
    %213 = arith.negf %212 : vector<1x32xf32>
    %214 = math.exp %213 : vector<1x32xf32>
    %cst_43 = arith.constant 1.000000e+00 : f32
    %215 = vector.broadcast %cst_43 : f32 to vector<1x32xf32>
    %216 = arith.addf %215, %214 : vector<1x32xf32>
    %217 = arith.divf %215, %216 : vector<1x32xf32>
    %218 = vector.extract_strided_slice %207 {offsets = [0, 32], sizes = [1, 32], strides = [1, 1]} : vector<1x96xf32> to vector<1x32xf32>
    %219 = vector.extract_strided_slice %209 {offsets = [0, 32], sizes = [1, 32], strides = [1, 1]} : vector<1x96xf32> to vector<1x32xf32>
    %220 = arith.addf %218, %219 : vector<1x32xf32>
    %221 = arith.negf %220 : vector<1x32xf32>
    %222 = math.exp %221 : vector<1x32xf32>
    %cst_44 = arith.constant 1.000000e+00 : f32
    %223 = vector.broadcast %cst_44 : f32 to vector<1x32xf32>
    %224 = arith.addf %223, %222 : vector<1x32xf32>
    %225 = arith.divf %223, %224 : vector<1x32xf32>
    %226 = vector.extract_strided_slice %207 {offsets = [0, 64], sizes = [1, 32], strides = [1, 1]} : vector<1x96xf32> to vector<1x32xf32>
    %227 = vector.extract_strided_slice %209 {offsets = [0, 64], sizes = [1, 32], strides = [1, 1]} : vector<1x96xf32> to vector<1x32xf32>
    %228 = arith.mulf %217, %227 : vector<1x32xf32>
    %229 = arith.addf %226, %228 : vector<1x32xf32>
    %230 = math.tanh %229 : vector<1x32xf32>
    %cst_45 = arith.constant 1.000000e+00 : f32
    %231 = vector.broadcast %cst_45 : f32 to vector<1x32xf32>
    %232 = arith.subf %231, %225 : vector<1x32xf32>
    %233 = arith.mulf %232, %230 : vector<1x32xf32>
    %234 = arith.mulf %225, %206 : vector<1x32xf32>
    %235 = arith.addf %233, %234 : vector<1x32xf32>
    %236 = vector.extract_strided_slice %29 {offsets = [7, 0], sizes = [1, 96], strides = [1, 1]} : vector<8x96xf32> to vector<1x96xf32>
    %cst_46 = arith.constant dense<0.000000e+00> : vector<1x96xf32>
    %237 = tpu.matmul %235, %30, %cst_46 {dimension_numbers = #tpu.dot_dimension_numbers<[1], [0], [0], [1], [0, 0, 1, 1], [], []>} : vector<1x32xf32>, vector<32x96xf32>, vector<1x96xf32> -> vector<1x96xf32>
    %238 = arith.addf %237, %31 : vector<1x96xf32>
    %239 = vector.extract_strided_slice %236 {offsets = [0, 0], sizes = [1, 32], strides = [1, 1]} : vector<1x96xf32> to vector<1x32xf32>
    %240 = vector.extract_strided_slice %238 {offsets = [0, 0], sizes = [1, 32], strides = [1, 1]} : vector<1x96xf32> to vector<1x32xf32>
    %241 = arith.addf %239, %240 : vector<1x32xf32>
    %242 = arith.negf %241 : vector<1x32xf32>
    %243 = math.exp %242 : vector<1x32xf32>
    %cst_47 = arith.constant 1.000000e+00 : f32
    %244 = vector.broadcast %cst_47 : f32 to vector<1x32xf32>
    %245 = arith.addf %244, %243 : vector<1x32xf32>
    %246 = arith.divf %244, %245 : vector<1x32xf32>
    %247 = vector.extract_strided_slice %236 {offsets = [0, 32], sizes = [1, 32], strides = [1, 1]} : vector<1x96xf32> to vector<1x32xf32>
    %248 = vector.extract_strided_slice %238 {offsets = [0, 32], sizes = [1, 32], strides = [1, 1]} : vector<1x96xf32> to vector<1x32xf32>
    %249 = arith.addf %247, %248 : vector<1x32xf32>
    %250 = arith.negf %249 : vector<1x32xf32>
    %251 = math.exp %250 : vector<1x32xf32>
    %cst_48 = arith.constant 1.000000e+00 : f32
    %252 = vector.broadcast %cst_48 : f32 to vector<1x32xf32>
    %253 = arith.addf %252, %251 : vector<1x32xf32>
    %254 = arith.divf %252, %253 : vector<1x32xf32>
    %255 = vector.extract_strided_slice %236 {offsets = [0, 64], sizes = [1, 32], strides = [1, 1]} : vector<1x96xf32> to vector<1x32xf32>
    %256 = vector.extract_strided_slice %238 {offsets = [0, 64], sizes = [1, 32], strides = [1, 1]} : vector<1x96xf32> to vector<1x32xf32>
    %257 = arith.mulf %246, %256 : vector<1x32xf32>
    %258 = arith.addf %255, %257 : vector<1x32xf32>
    %259 = math.tanh %258 : vector<1x32xf32>
    %cst_49 = arith.constant 1.000000e+00 : f32
    %260 = vector.broadcast %cst_49 : f32 to vector<1x32xf32>
    %261 = arith.subf %260, %254 : vector<1x32xf32>
    %262 = arith.mulf %261, %259 : vector<1x32xf32>
    %263 = arith.mulf %254, %235 : vector<1x32xf32>
    %264 = arith.addf %262, %263 : vector<1x32xf32>
    %265 = tpu.concatenate %61, %90, %119, %148, %177, %206, %235, %264 in 0 : vector<1x32xf32>, vector<1x32xf32>, vector<1x32xf32>, vector<1x32xf32>, vector<1x32xf32>, vector<1x32xf32>, vector<1x32xf32>, vector<1x32xf32> -> vector<8x32xf32>
    %c0_50 = arith.constant 0 : index
    %c0_51 = arith.constant 0 : index
    %266 = vector.load %arg7[%c0_50, %c0_51] : memref<8x32xf32, #tpu.memory_space<vmem>>, vector<8x32xf32>
    tpu.vector_store %arg7[%c0_50, %c0_51], %265 {strides = array<i32>} : memref<8x32xf32, #tpu.memory_space<vmem>>, vector<8x32xf32>,
    return
  }
}

</mosaic_0001>

<bundles_post_ra>
// kernel: tpu_custom_call.1
= control target key start
LH: loop header
LB: loop body
LE: loop exit
PB: predicated region body
PF: predicated region fallthrough
CT: control target
= control target key end

     0   :  { %12 = vsyncpa [#allocation4], 0  ;;  %s1667_s0 = inlined_call_operand.vmem [shape: s32[8], index: 0, kind: input, shape index: {}]   ;;  %s1668_s1 = inlined_call_operand.vmem [shape: f32[64,32], index: 1, kind: input, shape index: {}]   ;;  %s1669_s2 = inlined_call_operand.vmem [shape: f32[1,32], index: 2, kind: input, shape index: {}]   ;;  %s1670_s3 = inlined_call_operand.vmem [shape: f32[32,96], index: 3, kind: input, shape index: {}]   ;;  %s1671_s4 = inlined_call_operand.vmem [shape: f32[32,96], index: 4, kind: input, shape index: {}]   ;;  %s1672_s5 = inlined_call_operand.vmem [shape: f32[1,96], index: 5, kind: input, shape index: {}]   ;;  %s1673_s6 = inlined_call_operand.vmem [shape: f32[1,96], index: 6, kind: input, shape index: {}]   ;;  %s1674_s7 = inlined_call_operand.hbm [shape: f32[8,32], index: 7, kind: output, shape index: {}]  }
   0x1   :  { %13 = vsyncpa [#allocation3], 0  ;;  %s20_s26 = sshll.u32 %s1667_s0, 4  ;;  %s21_s26 = int_to_ptr.vmem [resolvable:$true] %s20_s26 }
   0x2   :  { %s1351_s27 = scalar_lea.vmem %s21_s26, 16  ;;  %p1356_p1 = scmp.lt.s32.totalorder %s21_s26, %s21_s26 }
   0x3   :  { %p1352_p0 = scmp.ne.s32.totalorder %s21_s26, %s1351_s27  ;;  %p1357_p2 = scmp.lt.s32.totalorder %s1351_s27, %s1351_s27 }
   0x5   :  { %p1358_p3 = por %p1357_p2, %p1356_p1 }
   0x7   :  { %p1359_p4 = pnand %p1358_p3, %p1352_p0 }
   0x9   :  { %1362 = shalt.err (!%p1359_p4)
}
   0xa   :  { %s1389_s28 = smov [#allocation2]  }
   0xb   :  { %23 = dma.vmem_to_smem %s21_s26, 16, %s1389_s28, [#allocation4]  }
   0xc   :  { %1385 = dma.done.wait [#allocation4], 16  }
   0xd   :  { %1386 = vsyncadd [#allocation4], 4294967280 }
   0xe   :  { %39 = sfence }
   0xf   :  { %v184_v0 = vld [vmem:[%s1671_s4] sm:$0xff]  ;;  %v185_v1 = vld [vmem:[%s1671_s4 + $0x8] sm:$0xff]  ;;  %v186_v2 = vld [vmem:[%s1671_s4 + $0x10] sm:$0xff]  ;;  %v1390_v3 = vmov 0.0|0.0   ;;  %s1462_s17 = sld [smem:[#allocation2]]  ;;  %vm1391_vm0 = vmmov 0   ;;  %v287_v54 = vlaneseq }
  0x10   :  { %1247 = vmatprep.subr.bf16.mxu1 %v1390_v3  ;;  %v1450_v4 = vpack.c.bf16 %v185_v1, %v184_v0  ;;  %v187_v5 = vld [vmem:[%s1671_s4 + $0x18] sm:$0xff]  ;;  %1241 = vmatprep.subr.bf16.mxu0 %v1390_v3  ;;  %v99_v6 = vld [vmem:[%s1670_s3] sm:$0xff]  ;;  %v100_v7 = vld [vmem:[%s1670_s3 + $0x8] sm:$0xff]  ;;  %v1392_v8 = vmov 0.0   ;;  %s1072_s21 = sld [smem:[#allocation2 + $0x1]]  ;;  %s1073_s22 = sld [smem:[#allocation2 + $0x2]] }
  0x11   :  { %1161 = vmatprep.mubr.msk.f32.mxu1 %vm1391_vm0, %v1392_v8  ;;  %v1242_v9 = vpack.c.bf16 %v100_v7, %v99_v6  ;;  %v101_v10 = vld [vmem:[%s1670_s3 + $0x10] sm:$0xff]  ;;  %v102_v11 = vld [vmem:[%s1670_s3 + $0x18] sm:$0xff]  ;;  %1150 = vmatprep.mubr.msk.f32.mxu0 %vm1391_vm0, %v1392_v8  ;;  %v1475_v12 = vpack.c.bf16 %v187_v5, %v186_v2  ;;  %s1074_s23 = sld [smem:[#allocation2 + $0x3]]  ;;  %s1075_s24 = sld [smem:[#allocation2 + $0x4]]  ;;  %vm110_vm1 = vcmask 261120   ;;  %vm85_vm2 = vcmask 1040384  }
  0x12   :  { %1249 = vmatpush3.bf16.msra.mxu1 %v1450_v4  ;;  %v1245_v13 = vpack.c.bf16 %v102_v11, %v101_v10  ;;  %s1076_s25 = sld [smem:[#allocation2 + $0x5]]  ;;  %s1479_s3 = sld [smem:[#allocation2 + $0x6]]  ;;  %v1487_v14 = vld [vmem:[%s1669_s2] sm:$0x1]  ;;  %vm87_vm3 = vcmask 1041408   ;;  %vm89_vm4 = vcmask 1042432  }
  0x13   :  { %1250 = vmatprep.subr.bf16.mxu1 %v1390_v3  ;;  %1243 = vmatpush3.bf16.msra.mxu0 %v1242_v9  ;;  %s1481_s26 = sld [smem:[#allocation2 + $0x7]]  ;;  %vm91_vm5 = vcmask 1043456   ;;  %vm93_vm6 = vcmask 1044480   ;;  %vm95_vm7 = vcmask 1045504   ;;  %vm97_vm8 = vcmask 1046528   ;;  %s1396_s30 = smov [#allocation5]  }
  0x14   :  { %1244 = vmatprep.subr.bf16.mxu0 %v1390_v3  ;;  %v1543_v37 = vld [vmem:[%s1673_s6] sm:$0x1]  ;;  %v288_v55 = vshrl.u32 %v287_v54, 7  ;;  %s1395_s6 = smov 32  }
  0x15   :  { %s41_s8 = scalar_lea.vmem %s1668_s1, %s1462_s17  ;;  %v1079_v43 = vld [vmem:[%s1672_s5] ss:$0 sm:$0xff]  ;;  %s1394_s5 = smov 96  }
  0x16   :  { %1252 = vmatpush3.bf16.msra.mxu1 %v1475_v12  ;;  %s44_s10 = scalar_lea.vmem %s1668_s1, %s1072_s21  ;;  %v42_v15 = vld [vmem:[%s41_s8] sm:$0x1]  ;;  %s47_s2 = scalar_lea.vmem %s1668_s1, %s1073_s22  ;;  %v289_v56 = vsub.s32 0, %v288_v55 }
  0x17   :  { %1246 = vmatpush3.bf16.msra.mxu0 %v1245_v13  ;;  %1259 = vmatprep.subr.bf16.mxu1 %v1390_v3  ;;  %v45_v16 = vld [vmem:[%s44_s10] sm:$0x1]  ;;  %s50_s15 = scalar_lea.vmem %s1668_s1, %s1074_s23  ;;  %s53_s18 = scalar_lea.vmem %s1668_s1, %s1075_s24 }
  0x18   :  { %1253 = vmatprep.subr.bf16.mxu0 %v1390_v3  ;;  %v48_v17 = vld [vmem:[%s47_s2] sm:$0x1]  ;;  %s56_s20 = scalar_lea.vmem %s1668_s1, %s1076_s25  ;;  %v65_v19 = vrot.slane %v45_v16, 7  ;;  %s59_s23 = scalar_lea.vmem %s1668_s1, %s1479_s3  ;;  %v290_v58 = vrot.slane %v1487_v14, %v289_v56 }
  0x19   :  { %1162 = vmatmul.mubr.msk.f32.vlgmr.msra.gmra.mrb[0].mxu1 %vm110_vm1, %v1487_v14  ;;  %v51_v18 = vld [vmem:[%s50_s15] sm:$0x1]  ;;  %s62_s29 = scalar_lea.vmem %s1668_s1, %s1481_s26  ;;  %v68_v22 = vrot.slane %v48_v17, 6  ;;  %s1393_s25 = smov 64  }
  0x1a   :  { %v54_v20 = vld [vmem:[%s53_s18] sm:$0x1]  ;;  %v71_v23 = vrot.slane %v51_v18, 5  ;;  %1261 = vmatpush3.bf16.msra.mxu1 %v1450_v4  ;;  %1183 = vmatprep.mubr.msk.f32.mxu1 %vm1391_vm0, %v1392_v8  ;;  %v86_v28 = vsel %vm85_vm2, %v42_v15, %v65_v19  ;;  %s1055_s8 = sshll.u32 %s1396_s30, 4  ;;  %s1056_s8 = int_to_ptr.vmem [resolvable:$true] %s1055_s8 }
  0x1b   :  { %v57_v21 = vld [vmem:[%s56_s20] sm:$0x1]  ;;  %v74_v26 = vrot.slane %v54_v20, 4  ;;  %1262 = vmatprep.subr.bf16.mxu1 %v1390_v3  ;;  %v88_v30 = vsel %vm87_vm3, %v86_v28, %v68_v22  ;;  %s1363_s9 = scalar_lea.vmem %s1056_s8, 128  ;;  %p1368_p6 = scmp.lt.s32.totalorder %s1056_s8, %s1056_s8 }
  0x1c   :  { %v60_v24 = vld [vmem:[%s59_s23] sm:$0x1]  ;;  %v77_v27 = vrot.slane %v57_v21, 3  ;;  %v90_v32 = vsel %vm89_vm4, %v88_v30, %v71_v23  ;;  %p1364_p5 = scmp.ne.s32.totalorder %s1056_s8, %s1363_s9  ;;  %p1369_p7 = scmp.lt.s32.totalorder %s1363_s9, %s1363_s9 }
  0x1d   :  { %v63_v25 = vld [vmem:[%s62_s29] sm:$0x1]  ;;  %v80_v29 = vrot.slane %v60_v24, 2  ;;  %v92_v33 = vsel %vm91_vm5, %v90_v32, %v74_v26 }
  0x1e   :  { %v83_v31 = vrot.slane %v63_v25, 1  ;;  %1264 = vmatpush3.bf16.msra.mxu1 %v1475_v12  ;;  %v94_v34 = vsel %vm93_vm6, %v92_v33, %v77_v27  ;;  %p1370_p8 = por %p1369_p7, %p1368_p6 }
  0x1f   :  { %1271 = vmatprep.subr.bf16.mxu1 %v1390_v3  ;;  %v96_v35 = vsel %vm95_vm7, %v94_v34, %v80_v29 }
  0x20   :  { %v98_v36 = vsel %vm97_vm8, %v96_v35, %v83_v31  ;;  %p1371_p9 = pnand %p1370_p8, %p1364_p5 }
  0x21   :  { %1151 = vmatmul.mubr.msk.f32.vlgmr.msra.gmra.mrb[0].mxu0 %vm110_vm1, %v98_v36 }
  0x22   :  { %1255 = vmatpush3.bf16.msra.mxu0 %v1450_v4  ;;  %1172 = vmatprep.mubr.msk.f32.mxu0 %vm1391_vm0, %v1392_v8 }
  0x23   :  { %1256 = vmatprep.subr.bf16.mxu0 %v1390_v3 }
  0x26   :  { %1258 = vmatpush3.bf16.msra.mxu0 %v1475_v12 }
  0x27   :  { %1265 = vmatprep.subr.bf16.mxu0 %v1390_v3 }
  0xec   :  { %v259_v38 = vpop.f32.mrb[0].mxu1 }
  0xed   :  { %v260_v39 = vadd.f32 %v259_v38, %v1543_v37  ;;  %v1163_v40 = vpop.f32.mrb[1].mxu1 }
  0xef   :  { %271 = vrot.lane.b32.xlu0 %v260_v39, %s1393_s25 }
  0xf4   :  { %v180_v41 = vpop.f32.mrb[0].mxu0 }
  0xf5   :  { %v1152_v42 = vpop.f32.mrb[1].mxu0  ;;  %v1550_v44 = vadd.f32 %v1079_v43, %v180_v41 }
  0xf7   :  { %v263_v45 = vadd.f32 %v260_v39, %v1550_v44 }
  0xf9   :  { %v1082_v46 = vmul.f32 -1.442695, %v263_v45 }
  0xfb   :  { %1303 = vpow2.f32 %v1082_v46 }
 0x105   :  { %v1304_v47 = vpop.eup %1303 }
 0x106   :  { %v267_v48 = vadd.f32 1.0, %v1304_v47 }
 0x108   :  { %1305 = vrcp.f32 %v267_v48 }
 0x112   :  { %v1306_v49 = vpop.eup %1305 }
 0x113   :  { %v281_v60 = vsub.f32 1.0, %v1306_v49 }
 0x161   :  { %v272_v50 = vpop.permute.xlu0 %271 }
 0x162   :  { %v274_v51 = vmul.f32 %v1306_v49, %v272_v50 }
 0x164   :  { %276 = vrot.lane.b32.xlu0 %v274_v51, %s1393_s25 }
 0x1d6   :  { %v277_v52 = vpop.permute.xlu0 %276 }
 0x1d7   :  { %v279_v53 = vadd.f32 %v277_v52, %v1550_v44 }
 0x1d9   :  { %1307 = vtanh.f32 %v279_v53 }
 0x1e3   :  { %v1308_v57 = vpop.eup %1307 }
 0x1e4   :  { %283 = vrot.lane.b32.xlu1 %v1308_v57, %s1394_s5 }
 0x1e8   :  { %291 = vrot.lane.b32.xlu1 %v290_v58, %s1395_s6 }
 0x256   :  { %v284_v59 = vpop.permute.xlu1 %283 }
 0x257   :  { %v286_v62 = vmul.f32 %v284_v59, %v281_v60 }
 0x25a   :  { %v292_v61 = vpop.permute.xlu1 %291 }
 0x25b   :  { %v294_v63 = vmul.f32 %v1306_v49, %v292_v61 }
 0x25d   :  { %v1557_v0 = vadd.f32 %v294_v63, %v286_v62 }
 0x25f   :  { %297 = vrot.lane.b32.xlu0 %v1557_v0, %s1394_s5  ;;  %v397_v21 = vrot.slane %v1557_v0, 7 }
 0x2d1   :  { %v298_v1 = vpop.permute.xlu0 %297 }
 0x2d2   :  { %1173 = vmatmul.mubr.msk.f32.vlgmr.msra.gmra.mrb[2].mxu0 %vm110_vm1, %v298_v1 }
 0x2d3   :  { %1267 = vmatpush3.bf16.msra.mxu0 %v1450_v4  ;;  %1194 = vmatprep.mubr.msk.f32.mxu0 %vm1391_vm0, %v1392_v8 }
 0x2d4   :  { %1268 = vmatprep.subr.bf16.mxu0 %v1390_v3 }
 0x2d7   :  { %1270 = vmatpush3.bf16.msra.mxu0 %v1475_v12 }
 0x2d8   :  { %1277 = vmatprep.subr.bf16.mxu0 %v1390_v3 }
 0x3a5   :  { %v367_v2 = vpop.f32.mrb[2].mxu0 }
 0x3a6   :  { %v368_v5 = vadd.f32 %v367_v2, %v1543_v37  ;;  %v1174_v6 = vpop.f32.mrb[3].mxu0 }
 0x3a8   :  { %v372_v7 = vrot.slane %v368_v5, 7 }
 0x3aa   :  { %381 = vrot.lane.b32.xlu1 %v372_v7, %s1393_s25  ;;  %v374_v9 = vadd.f32 %v372_v7, %v1550_v44 }
 0x3ac   :  { %v1084_v10 = vmul.f32 -1.442695, %v374_v9 }
 0x3ae   :  { %1309 = vpow2.f32 %v1084_v10 }
 0x3b8   :  { %v1310_v11 = vpop.eup %1309 }
 0x3b9   :  { %v378_v13 = vadd.f32 1.0, %v1310_v11 }
 0x3bb   :  { %1311 = vrcp.f32 %v378_v13 }
 0x3c5   :  { %v1312_v14 = vpop.eup %1311 }
 0x3c6   :  { %v391_v20 = vsub.f32 1.0, %v1312_v14  ;;  %v399_v23 = vmul.f32 %v1312_v14, %v397_v21 }
 0x41c   :  { %v382_v15 = vpop.permute.xlu1 %381 }
 0x41d   :  { %v384_v16 = vmul.f32 %v1312_v14, %v382_v15 }
 0x41f   :  { %386 = vrot.lane.b32.xlu0 %v384_v16, %s1393_s25 }
 0x491   :  { %v387_v17 = vpop.permute.xlu0 %386 }
 0x492   :  { %v389_v18 = vadd.f32 %v387_v17, %v1550_v44 }
 0x494   :  { %1313 = vtanh.f32 %v389_v18 }
 0x49e   :  { %v1314_v19 = vpop.eup %1313 }
 0x49f   :  { %393 = vrot.lane.b32.xlu1 %v1314_v19, %s1394_s5 }
 0x511   :  { %v394_v22 = vpop.permute.xlu1 %393 }
 0x512   :  { %v396_v24 = vmul.f32 %v394_v22, %v391_v20 }
 0x514   :  { %v400_v25 = vadd.f32 %v399_v23, %v396_v24 }
 0x516   :  { %v402_v26 = vrot.slane %v400_v25, 1  ;;  %v503_v45 = vrot.slane %v400_v25, 7  ;;  %v1037_v50 = vsel %vm85_vm2, %v1557_v0, %v400_v25 }
 0x518   :  { %403 = vrot.lane.b32.xlu0 %v402_v26, %s1394_s5 }
 0x58a   :  { %v404_v27 = vpop.permute.xlu0 %403 }
 0x58b   :  { %1184 = vmatmul.mubr.msk.f32.vlgmr.msra.gmra.mrb[2].mxu1 %vm110_vm1, %v404_v27 }
 0x58c   :  { %1273 = vmatpush3.bf16.msra.mxu1 %v1450_v4  ;;  %1205 = vmatprep.mubr.msk.f32.mxu1 %vm1391_vm0, %v1392_v8 }
 0x58d   :  { %1274 = vmatprep.subr.bf16.mxu1 %v1390_v3 }
 0x590   :  { %1276 = vmatpush3.bf16.msra.mxu1 %v1475_v12 }
 0x591   :  { %1283 = vmatprep.subr.bf16.mxu1 %v1390_v3 }
 0x65e   :  { %v473_v28 = vpop.f32.mrb[2].mxu1 }
 0x65f   :  { %v474_v29 = vadd.f32 %v473_v28, %v1543_v37  ;;  %v1185_v30 = vpop.f32.mrb[3].mxu1 }
 0x661   :  { %v478_v31 = vrot.slane %v474_v29, 6 }
 0x663   :  { %487 = vrot.lane.b32.xlu1 %v478_v31, %s1393_s25  ;;  %v480_v32 = vadd.f32 %v478_v31, %v1550_v44 }
 0x665   :  { %v1086_v33 = vmul.f32 -1.442695, %v480_v32 }
 0x667   :  { %1315 = vpow2.f32 %v1086_v33 }
 0x671   :  { %v1316_v34 = vpop.eup %1315 }
 0x672   :  { %v484_v35 = vadd.f32 1.0, %v1316_v34 }
 0x674   :  { %1317 = vrcp.f32 %v484_v35 }
 0x67e   :  { %v1318_v36 = vpop.eup %1317 }
 0x67f   :  { %v497_v43 = vsub.f32 1.0, %v1318_v36  ;;  %v505_v47 = vmul.f32 %v1318_v36, %v503_v45 }
 0x6d5   :  { %v488_v38 = vpop.permute.xlu1 %487 }
 0x6d6   :  { %v490_v39 = vmul.f32 %v1318_v36, %v488_v38 }
 0x6d8   :  { %492 = vrot.lane.b32.xlu0 %v490_v39, %s1393_s25 }
 0x74a   :  { %v493_v40 = vpop.permute.xlu0 %492 }
 0x74b   :  { %v495_v41 = vadd.f32 %v493_v40, %v1550_v44 }
 0x74d   :  { %1319 = vtanh.f32 %v495_v41 }
 0x757   :  { %v1320_v42 = vpop.eup %1319 }
 0x758   :  { %499 = vrot.lane.b32.xlu1 %v1320_v42, %s1394_s5 }
 0x7ca   :  { %v500_v46 = vpop.permute.xlu1 %499 }
 0x7cb   :  { %v502_v48 = vmul.f32 %v500_v46, %v497_v43 }
 0x7cd   :  { %v506_v49 = vadd.f32 %v505_v47, %v502_v48 }
 0x7cf   :  { %v1038_v51 = vsel %vm87_vm3, %v1037_v50, %v506_v49  ;;  %v508_v52 = vrot.slane %v506_v49, 2  ;;  %v609_v7 = vrot.slane %v506_v49, 7 }
 0x7d1   :  { %509 = vrot.lane.b32.xlu0 %v508_v52, %s1394_s5 }
 0x843   :  { %v510_v53 = vpop.permute.xlu0 %509 }
 0x844   :  { %1195 = vmatmul.mubr.msk.f32.vlgmr.msra.gmra.mrb[4].mxu0 %vm110_vm1, %v510_v53 }
 0x845   :  { %1279 = vmatpush3.bf16.msra.mxu0 %v1450_v4  ;;  %1216 = vmatprep.mubr.msk.f32.mxu0 %vm1391_vm0, %v1392_v8 }
 0x846   :  { %1280 = vmatprep.subr.bf16.mxu0 %v1390_v3 }
 0x849   :  { %1282 = vmatpush3.bf16.msra.mxu0 %v1475_v12 }
 0x84a   :  { %1289 = vmatprep.subr.bf16.mxu0 %v1390_v3 }
 0x917   :  { %v579_v54 = vpop.f32.mrb[4].mxu0 }
 0x918   :  { %v580_v55 = vadd.f32 %v579_v54, %v1543_v37  ;;  %v1196_v56 = vpop.f32.mrb[5].mxu0 }
 0x91a   :  { %v584_v57 = vrot.slane %v580_v55, 5 }
 0x91c   :  { %593 = vrot.lane.b32.xlu1 %v584_v57, %s1393_s25  ;;  %v586_v58 = vadd.f32 %v584_v57, %v1550_v44 }
 0x91e   :  { %v1088_v59 = vmul.f32 -1.442695, %v586_v58 }
 0x920   :  { %1321 = vpow2.f32 %v1088_v59 }
 0x92a   :  { %v1322_v60 = vpop.eup %1321 }
 0x92b   :  { %v590_v61 = vadd.f32 1.0, %v1322_v60 }
 0x92d   :  { %1323 = vrcp.f32 %v590_v61 }
 0x937   :  { %v1324_v62 = vpop.eup %1323 }
 0x938   :  { %v603_v6 = vsub.f32 1.0, %v1324_v62  ;;  %v611_v10 = vmul.f32 %v1324_v62, %v609_v7 }
 0x98e   :  { %v594_v63 = vpop.permute.xlu1 %593 }
 0x98f   :  { %v596_v0 = vmul.f32 %v1324_v62, %v594_v63 }
 0x991   :  { %598 = vrot.lane.b32.xlu0 %v596_v0, %s1393_s25 }
 0xa03   :  { %v599_v1 = vpop.permute.xlu0 %598 }
 0xa04   :  { %v601_v2 = vadd.f32 %v599_v1, %v1550_v44 }
 0xa06   :  { %1325 = vtanh.f32 %v601_v2 }
 0xa10   :  { %v1326_v5 = vpop.eup %1325 }
 0xa11   :  { %605 = vrot.lane.b32.xlu1 %v1326_v5, %s1394_s5 }
 0xa83   :  { %v606_v9 = vpop.permute.xlu1 %605 }
 0xa84   :  { %v608_v11 = vmul.f32 %v606_v9, %v603_v6 }
 0xa86   :  { %v612_v13 = vadd.f32 %v611_v10, %v608_v11 }
 0xa88   :  { %v1039_v14 = vsel %vm89_vm4, %v1038_v51, %v612_v13  ;;  %v614_v15 = vrot.slane %v612_v13, 3  ;;  %v715_v32 = vrot.slane %v612_v13, 7 }
 0xa8a   :  { %615 = vrot.lane.b32.xlu0 %v614_v15, %s1394_s5 }
 0xafc   :  { %v616_v16 = vpop.permute.xlu0 %615 }
 0xafd   :  { %1206 = vmatmul.mubr.msk.f32.vlgmr.msra.gmra.mrb[4].mxu1 %vm110_vm1, %v616_v16 }
 0xafe   :  { %1285 = vmatpush3.bf16.msra.mxu1 %v1450_v4  ;;  %1227 = vmatprep.mubr.msk.f32.mxu1 %vm1391_vm0, %v1392_v8 }
 0xaff   :  { %1286 = vmatprep.subr.bf16.mxu1 %v1390_v3 }
 0xb02   :  { %1288 = vmatpush3.bf16.msra.mxu1 %v1475_v12 }
 0xbd0   :  { %v685_v17 = vpop.f32.mrb[4].mxu1 }
 0xbd1   :  { %v686_v18 = vadd.f32 %v685_v17, %v1543_v37  ;;  %v1207_v19 = vpop.f32.mrb[5].mxu1 }
 0xbd3   :  { %v690_v20 = vrot.slane %v686_v18, 4 }
 0xbd5   :  { %699 = vrot.lane.b32.xlu1 %v690_v20, %s1393_s25  ;;  %v692_v21 = vadd.f32 %v690_v20, %v1550_v44 }
 0xbd7   :  { %v1090_v22 = vmul.f32 -1.442695, %v692_v21 }
 0xbd9   :  { %1327 = vpow2.f32 %v1090_v22 }
 0xbe3   :  { %v1328_v23 = vpop.eup %1327 }
 0xbe4   :  { %v696_v24 = vadd.f32 1.0, %v1328_v23 }
 0xbe6   :  { %1329 = vrcp.f32 %v696_v24 }
 0xbf0   :  { %v1330_v25 = vpop.eup %1329 }
 0xbf1   :  { %v709_v31 = vsub.f32 1.0, %v1330_v25  ;;  %v717_v34 = vmul.f32 %v1330_v25, %v715_v32 }
 0xc47   :  { %v700_v26 = vpop.permute.xlu1 %699 }
 0xc48   :  { %v702_v27 = vmul.f32 %v1330_v25, %v700_v26 }
 0xc4a   :  { %704 = vrot.lane.b32.xlu0 %v702_v27, %s1393_s25 }
 0xcbc   :  { %v705_v28 = vpop.permute.xlu0 %704 }
 0xcbd   :  { %v707_v29 = vadd.f32 %v705_v28, %v1550_v44 }
 0xcbf   :  { %1331 = vtanh.f32 %v707_v29 }
 0xcc9   :  { %v1332_v30 = vpop.eup %1331 }
 0xcca   :  { %711 = vrot.lane.b32.xlu1 %v1332_v30, %s1394_s5 }
 0xd3c   :  { %v712_v33 = vpop.permute.xlu1 %711 }
 0xd3d   :  { %v714_v35 = vmul.f32 %v712_v33, %v709_v31 }
 0xd3f   :  { %v718_v36 = vadd.f32 %v717_v34, %v714_v35 }
 0xd41   :  { %v1040_v38 = vsel %vm91_vm5, %v1039_v14, %v718_v36  ;;  %v720_v39 = vrot.slane %v718_v36, 4  ;;  %v821_v53 = vrot.slane %v718_v36, 7 }
 0xd43   :  { %721 = vrot.lane.b32.xlu0 %v720_v39, %s1394_s5 }
 0xdb5   :  { %v722_v40 = vpop.permute.xlu0 %721 }
 0xdb6   :  { %1217 = vmatmul.mubr.msk.f32.vlgmr.msra.gmra.mrb[6].mxu0 %vm110_vm1, %v722_v40 }
 0xdb7   :  { %1291 = vmatpush3.bf16.msra.mxu0 %v1450_v4  ;;  %1238 = vmatprep.mubr.msk.f32.mxu0 %vm1391_vm0, %v1392_v8 }
 0xdb8   :  { %1292 = vmatprep.subr.bf16.mxu0 %v1390_v3 }
 0xdbb   :  { %1294 = vmatpush3.bf16.msra.mxu0 %v1475_v12 }
 0xe89   :  { %v791_v41 = vpop.f32.mrb[6].mxu0 }
 0xe8a   :  { %v792_v42 = vadd.f32 %v791_v41, %v1543_v37  ;;  %v1218_v43 = vpop.f32.mrb[7].mxu0 }
 0xe8c   :  { %v796_v45 = vrot.slane %v792_v42, 3 }
 0xe8e   :  { %805 = vrot.lane.b32.xlu1 %v796_v45, %s1393_s25  ;;  %v798_v46 = vadd.f32 %v796_v45, %v1550_v44 }
 0xe90   :  { %v1092_v47 = vmul.f32 -1.442695, %v798_v46 }
 0xe92   :  { %1333 = vpow2.f32 %v1092_v47 }
 0xe9c   :  { %v1334_v48 = vpop.eup %1333 }
 0xe9d   :  { %v802_v4 = vadd.f32 1.0, %v1334_v48 }
 0xe9f   :  { %1335 = vrcp.f32 %v802_v4 }
 0xea9   :  { %v1336_v49 = vpop.eup %1335 }
 0xeaa   :  { %v815_v52 = vsub.f32 1.0, %v1336_v49  ;;  %v823_v55 = vmul.f32 %v1336_v49, %v821_v53 }
 0xf00   :  { %v806_v8 = vpop.permute.xlu1 %805 }
 0xf01   :  { %v808_v50 = vmul.f32 %v1336_v49, %v806_v8 }
 0xf03   :  { %810 = vrot.lane.b32.xlu0 %v808_v50, %s1393_s25 }
 0xf75   :  { %v811_v3 = vpop.permute.xlu0 %810 }
 0xf76   :  { %v813_v12 = vadd.f32 %v811_v3, %v1550_v44 }
 0xf78   :  { %1337 = vtanh.f32 %v813_v12 }
 0xf82   :  { %v1338_v51 = vpop.eup %1337 }
 0xf83   :  { %817 = vrot.lane.b32.xlu1 %v1338_v51, %s1394_s5 }
 0xff5   :  { %v818_v54 = vpop.permute.xlu1 %817 }
 0xff6   :  { %v820_v56 = vmul.f32 %v818_v54, %v815_v52 }
 0xff8   :  { %v824_v57 = vadd.f32 %v823_v55, %v820_v56 }
 0xffa   :  { %v826_v58 = vrot.slane %v824_v57, 5  ;;  %v1041_v59 = vsel %vm93_vm6, %v1040_v38, %v824_v57  ;;  %v927_v16 = vrot.slane %v824_v57, 7 }
 0xffc   :  { %827 = vrot.lane.b32.xlu0 %v826_v58, %s1394_s5 }
0x106e   :  { %v828_v60 = vpop.permute.xlu0 %827 }
0x106f   :  { %1228 = vmatmul.mubr.msk.f32.vlgmr.msra.gmra.mrb[6].mxu1 %vm110_vm1, %v828_v60 }
0x1142   :  { %v897_v61 = vpop.f32.mrb[6].mxu1 }
0x1143   :  { %v898_v62 = vadd.f32 %v897_v61, %v1543_v37  ;;  %v1229_v63 = vpop.f32.mrb[7].mxu1 }
0x1145   :  { %v902_v0 = vrot.slane %v898_v62, 2 }
0x1147   :  { %911 = vrot.lane.b32.xlu1 %v902_v0, %s1393_s25  ;;  %v904_v1 = vadd.f32 %v902_v0, %v1550_v44 }
0x1149   :  { %v1094_v2 = vmul.f32 -1.442695, %v904_v1 }
0x114b   :  { %1339 = vpow2.f32 %v1094_v2 }
0x1155   :  { %v1340_v5 = vpop.eup %1339 }
0x1156   :  { %v908_v6 = vadd.f32 1.0, %v1340_v5 }
0x1158   :  { %1341 = vrcp.f32 %v908_v6 }
0x1162   :  { %v1342_v7 = vpop.eup %1341 }
0x1163   :  { %v921_v15 = vsub.f32 1.0, %v1342_v7  ;;  %v929_v18 = vmul.f32 %v1342_v7, %v927_v16 }
0x11b9   :  { %v912_v9 = vpop.permute.xlu1 %911 }
0x11ba   :  { %v914_v10 = vmul.f32 %v1342_v7, %v912_v9 }
0x11bc   :  { %916 = vrot.lane.b32.xlu0 %v914_v10, %s1393_s25 }
0x122e   :  { %v917_v11 = vpop.permute.xlu0 %916 }
0x122f   :  { %v919_v13 = vadd.f32 %v917_v11, %v1550_v44 }
0x1231   :  { %1343 = vtanh.f32 %v919_v13 }
0x123b   :  { %v1344_v14 = vpop.eup %1343 }
0x123c   :  { %923 = vrot.lane.b32.xlu1 %v1344_v14, %s1394_s5 }
0x12ae   :  { %v924_v17 = vpop.permute.xlu1 %923 }
0x12af   :  { %v926_v19 = vmul.f32 %v924_v17, %v921_v15 }
0x12b1   :  { %v930_v20 = vadd.f32 %v929_v18, %v926_v19 }
0x12b3   :  { %v932_v21 = vrot.slane %v930_v20, 6  ;;  %v1042_v22 = vsel %vm95_vm7, %v1041_v59, %v930_v20  ;;  %v1033_v39 = vrot.slane %v930_v20, 7 }
0x12b5   :  { %933 = vrot.lane.b32.xlu0 %v932_v21, %s1394_s5 }
0x1327   :  { %v934_v23 = vpop.permute.xlu0 %933 }
0x1328   :  { %1239 = vmatmul.mubr.msk.f32.vlgmr.msra.gmra.mrb[8].mxu0 %vm110_vm1, %v934_v23 }
0x13fb   :  { %v1003_v24 = vpop.f32.mrb[8].mxu0 }
0x13fc   :  { %v1004_v25 = vadd.f32 %v1003_v24, %v1543_v37  ;;  %v1240_v26 = vpop.f32.mrb[9].mxu0 }
0x13fe   :  { %v1008_v27 = vrot.slane %v1004_v25, 1 }
0x1400   :  { %1017 = vrot.lane.b32.xlu1 %v1008_v27, %s1393_s25  ;;  %v1010_v28 = vadd.f32 %v1008_v27, %v1550_v44 }
0x1402   :  { %v1096_v29 = vmul.f32 -1.442695, %v1010_v28 }
0x1404   :  { %1345 = vpow2.f32 %v1096_v29 }
0x140e   :  { %v1346_v30 = vpop.eup %1345 }
0x140f   :  { %v1014_v31 = vadd.f32 1.0, %v1346_v30 }
0x1411   :  { %1347 = vrcp.f32 %v1014_v31 }
0x141b   :  { %v1348_v32 = vpop.eup %1347 }
0x141c   :  { %v1027_v38 = vsub.f32 1.0, %v1348_v32  ;;  %v1035_v41 = vmul.f32 %v1348_v32, %v1033_v39 }
0x1472   :  { %v1018_v33 = vpop.permute.xlu1 %1017 }
0x1473   :  { %v1020_v34 = vmul.f32 %v1348_v32, %v1018_v33 }
0x1475   :  { %1022 = vrot.lane.b32.xlu0 %v1020_v34, %s1393_s25 }
0x14e7   :  { %v1023_v35 = vpop.permute.xlu0 %1022 }
0x14e8   :  { %v1025_v36 = vadd.f32 %v1023_v35, %v1550_v44 }
0x14ea   :  { %1349 = vtanh.f32 %v1025_v36 }
0x14f4   :  { %v1350_v37 = vpop.eup %1349 }
0x14f5   :  { %1029 = vrot.lane.b32.xlu1 %v1350_v37, %s1394_s5 }
0x1567   :  { %v1030_v40 = vpop.permute.xlu1 %1029 }
0x1568   :  { %v1032_v42 = vmul.f32 %v1030_v40, %v1027_v38 }
0x156a   :  { %v1036_v43 = vadd.f32 %v1035_v41, %v1032_v42 }
0x156c   :  { %v1043_v45 = vsel %vm97_vm8, %v1042_v22, %v1036_v43 }
0x156d   :  { %1045 = vrot.lane.b32.xlu0 %v1043_v45, %s1394_s5 }
0x15df   :  { %v1046_v46 = vpop.permute.xlu0 %1045 }
0x15e0   :  { %1048 = vst.msk [vmem:[#allocation5] sm:$0xff] %vm110_vm1, %v1046_v46 }
0x15e1   :  { %1374 = shalt.err (!%p1371_p9)
}
0x15e2   :  { %s1375_s11 = scalar_lea.hbm %s1674_s7, 128 }
0x15e3   :  { %p1376_p10 = scmp.ne.s32.totalorder %s1674_s7, %s1375_s11  ;;  %p1379_p11 = scmp.lt.u32.totalorder %s1375_s11, %s1674_s7 }
0x15e5   :  { %p1381_p12 = pnand %p1379_p11, %p1376_p10 }
0x15e7   :  { %1384 = shalt.err (!%p1381_p12)
}
0x15e8   :  { %1058 = dma.vmem_to_hbm [thread:$0]  %s1056_s8, 128, %s1674_s7, [#allocation3]  }
0x15e9   :  { %1387 = dma.done.wait [#allocation3], 128  }
0x15ea   :  { %1388 = vsyncadd [#allocation3], 4294967168 }
0x15eb   :  { %1062 = vsyncpa [#allocation3], 1 }
0x15ec   :  { %1063 = vsyncpa [#allocation4], 1 }

</bundles_post_ra>
